<compile_context>
chip_gen: v7x
topology: tpu7x:2x2x1
jax: 0.10.0
libtpu: 0.0.40
codegen_flags: <defaults>
</compile_context>

<pallas_src>
import jax
import jax.numpy as jnp
from jax import lax
from jax.experimental import pallas as pl
from jax.experimental.pallas import tpu as pltpu


def _cdiv(a, b):
    return -(-a // b)


# ---------------------------------------------------------------------------
# Pallas kernel: one batch-block of the fused 1x1-conv head.
#   x_ref: (tb, Cf, HW) bf16   w_ref: (E, Cf) bf16   b_ref: (E, 1) f32
#   o_ref: (tb, E, HW)
# Per batch item: Y = W @ X  + bias   (writes PyTorch's (B, E, HW) directly)
# ---------------------------------------------------------------------------
def head_matmul_kernel(x_ref, w_ref, b_ref, o_ref):
    w = w_ref[...]
    # Hoist the lane-broadcast of the bias out of the per-item loop
    # (JAX does not CSE broadcast_in_dim).
    bias = jnp.broadcast_to(b_ref[...], (o_ref.shape[1], o_ref.shape[2]))
    for i in range(x_ref.shape[0]):                  # static, small unroll
        acc = jnp.dot(w, x_ref[i], preferred_element_type=jnp.float32)
        o_ref[i] = (acc + bias).astype(o_ref.dtype)


def _resident_spec(block_shape, index_map):
    """BlockSpec for a VMEM-resident operand (constant index_map).

    Single-buffer it when pipeline_mode/pl.Buffered is available (double
    buffering a constant block buys nothing and wastes VMEM on v7x);
    otherwise fall back to a plain BlockSpec.
    """
    if hasattr(pl, "Buffered"):
        try:
            return pl.BlockSpec(block_shape, index_map,
                                pipeline_mode=pl.Buffered(1))
        except TypeError:
            pass
    return pl.BlockSpec(block_shape, index_map)


def encoder_head_pallas(feats, w, b, *, out_dtype=jnp.bfloat16,
                        x_block_target_bytes=4 << 20):
    """1x1-conv head + bias.

    feats: (B, C_feat, HW) or (B, C_feat, h, w)  ->  (B, E, HW)  (PyTorch layout).
    """
    if feats.ndim == 4:
        B, Cf, h, wsp = feats.shape
        feats = feats.reshape(B, Cf, h * wsp)        # free row-major reshape
    B, Cf, HW = feats.shape
    E = w.shape[0]

    compute_dtype = jnp.bfloat16
    x = feats.astype(compute_dtype)                  # no-op: backbone emits bf16
    wm = w.reshape(E, Cf).astype(compute_dtype)      # (E,Cf) or (E,Cf,1,1) torch layout
    bm = b.reshape(E, 1).astype(jnp.float32)

    # Batch items per grid step: large enough to amortize the ~0.35us/step
    # pipeline overhead (target ~4 MiB of X per step), but always >= 2
    # (balanced) grid steps when B >= 2 so both v7x TensorCores get work.
    itemsize = jnp.dtype(compute_dtype).itemsize
    per_item_bytes = max(1, Cf * HW * itemsize)
    tb = max(1, min(B, x_block_target_bytes // per_item_bytes))
    g = _cdiv(B, tb)
    if B >= 2:
        g = max(g, 2)
    tb = _cdiv(B, g)
    grid = (_cdiv(B, tb),)

    cost = pl.CostEstimate(
        flops=2 * B * E * Cf * HW,
        transcendentals=0,
        bytes_accessed=(B * Cf * HW * itemsize          # X
                        + E * Cf * itemsize             # W
                        + E * 4                         # bias
                        + B * E * HW * jnp.dtype(out_dtype).itemsize),
    )

    # Per-step VMEM: X block (double-buffered) + resident W/bias + out block.
    # Even at production Cf=2048 / E=512 / tb~4 this is a few MiB, far under
    # the 32 MiB scoped default and v7x's 64 MiB physical VMEM.
    return pl.pallas_call(
        head_matmul_kernel,
        out_shape=jax.ShapeDtypeStruct((B, E, HW), out_dtype),
        grid=grid,
        in_specs=[
            # Natural-layout activations; trailing block dims equal the full
            # array dims, so the (8,128) rule holds with no padded HBM copy.
            pl.BlockSpec((tb, Cf, HW), lambda i: (i, 0, 0)),
            _resident_spec((E, Cf), lambda i: (0, 0)),     # resident W
            _resident_spec((E, 1), lambda i: (0, 0)),      # resident bias
        ],
        out_specs=pl.BlockSpec((tb, E, HW), lambda i: (i, 0, 0)),
        compiler_params=pltpu.CompilerParams(
            dimension_semantics=("parallel",),
        ),
        cost_estimate=cost,
    )(x, wm, bm)


# ---------------------------------------------------------------------------
# Plain-JAX glue: deterministic stand-in backbone (replaces resnet trunk).
# ---------------------------------------------------------------------------
def backbone(images, params, out_dtype=jnp.bfloat16):
    """images: (B, 3, H, W) NCHW -> feature map (B, C_feat, H/4, W/4).

    Emits bf16 by default so the Pallas head DMAs half the activation bytes
    (the cast fuses into the last conv's XLA epilogue).
    """
    dn = ("NCHW", "OIHW", "NCHW")
    x = lax.conv_general_dilated(images, params["conv1_w"], window_strides=(2, 2),
                                 padding="SAME", dimension_numbers=dn)
    x = jax.nn.relu(x + params["conv1_b"][None, :, None, None])
    x = lax.conv_general_dilated(x, params["conv2_w"], window_strides=(2, 2),
                                 padding="SAME", dimension_numbers=dn)
    x = jax.nn.relu(x + params["conv2_b"][None, :, None, None])
    return x.astype(out_dtype)


def encoder_cnn_forward(images, params, *, out_dtype=jnp.bfloat16):
    feats = backbone(images, params)                 # (B, C_feat, h, w) bf16
    feats = lax.stop_gradient(feats)                 # keep_cnn_gradients=False
    # self.linear = Conv2d(C_feat, embed, 1) + Dropout2d (identity at eval)
    out = encoder_head_pallas(feats, params["head_w"], params["head_b"],
                              out_dtype=out_dtype)
    return out                                       # (B, embed_size, h*w)


def init_params(key, c_in=3, c_mid=16, c_feat=32, embed_size=8):
    ks = jax.random.split(key, 6)
    scale = 0.1
    return {
        "conv1_w": scale * jax.random.normal(ks[0], (c_mid, c_in, 3, 3), jnp.float32),
        "conv1_b": scale * jax.random.normal(ks[1], (c_mid,), jnp.float32),
        "conv2_w": scale * jax.random.normal(ks[2], (c_feat, c_mid, 3, 3), jnp.float32),
        "conv2_b": scale * jax.random.normal(ks[3], (c_feat,), jnp.float32),
        # 1x1 conv head: torch weight (E, C_feat, 1, 1) -> stored (E, C_feat)
        "head_w": scale * jax.random.normal(ks[4], (embed_size, c_feat), jnp.float32),
        "head_b": scale * jax.random.normal(ks[5], (embed_size,), jnp.float32),
    }


if __name__ == "__main__":
    key = jax.random.PRNGKey(0)
    k_img, k_par = jax.random.split(key)

    B, C_in, H, W = 2, 3, 16, 16
    embed_size = 8
    images = jax.random.normal(k_img, (B, C_in, H, W), jnp.float32)
    params = init_params(k_par, c_in=C_in, c_feat=32, embed_size=embed_size)

    out = encoder_cnn_forward(images, params)
    out = jax.block_until_ready(out)

    # --- reference checks -------------------------------------------------
    hw = (H // 4) * (W // 4)
    assert out.shape == (B, embed_size, hw)
    out_f = out.astype(jnp.float32)

    # Check against the exact inputs the kernel saw (bf16 feats, bf16 W,
    # f32 accumulate); tolerance absorbs the bf16 output rounding.
    feats_bf = backbone(images, params).astype(jnp.float32)
    wq = params["head_w"].astype(jnp.bfloat16).astype(jnp.float32)
    ref_bf = (jnp.einsum("ec,bchw->behw", wq, feats_bf)
              + params["head_b"][None, :, None, None]).reshape(B, embed_size, hw)
    assert jnp.allclose(out_f, ref_bf, atol=1e-2, rtol=1e-2)

    # Full-f32 semantics check (loose tolerance: documented bf16 rounding of
    # feats / W / output vs the PyTorch f32 Conv2d head).
    feats_f32 = backbone(images, params, out_dtype=jnp.float32)
    ref_f32 = (jnp.einsum("ec,bchw->behw", params["head_w"], feats_f32)
               + params["head_b"][None, :, None, None]).reshape(B, embed_size, hw)
    assert jnp.allclose(out_f, ref_f32, atol=2e-2, rtol=2e-2)

    print("KERNEL_OK")
</pallas_src>

<mosaic_0001>
module attributes {stable_mosaic.version = 11 : i64} {
  func.func @head_matmul_kernel(%arg0: i32, %arg1: memref<1x32x16xbf16, #tpu.memory_space<vmem>>, %arg2: memref<8x32xbf16, #tpu.memory_space<vmem>>, %arg3: memref<8x1xf32, #tpu.memory_space<vmem>>, %arg4: memref<1x8x16xbf16, #tpu.memory_space<vmem>>) attributes {dimension_semantics = [#tpu.dimension_semantics<parallel>], iteration_bounds = array<i64: 2>, scalar_prefetch = 0 : i64, scratch_operands = 0 : i64, tpu.core_type = #tpu.core_type<tc>, window_params = [{transform_indices = @transform_0, window_bounds = array<i64: 1, 32, 16>}, {pipeline_mode = #tpu.pipeline_mode<synchronous>, transform_indices = @transform_1, window_bounds = array<i64: 8, 32>}, {pipeline_mode = #tpu.pipeline_mode<synchronous>, transform_indices = @transform_2, window_bounds = array<i64: 8, 1>}, {transform_indices = @transform_3, window_bounds = array<i64: 1, 8, 16>}]} {
    %c0 = arith.constant 0 : index
    %c0_0 = arith.constant 0 : index
    %0 = vector.load %arg2[%c0, %c0_0] : memref<8x32xbf16, #tpu.memory_space<vmem>>, vector<8x32xbf16>
    %c0_1 = arith.constant 0 : index
    %c0_2 = arith.constant 0 : index
    %1 = vector.load %arg3[%c0_1, %c0_2] : memref<8x1xf32, #tpu.memory_space<vmem>>, vector<8x1xf32>
    %2 = vector.shape_cast %1 : vector<8x1xf32> to vector<8x1xf32>
    %3 = vector.broadcast %2 : vector<8x1xf32> to vector<8x16xf32>
    %c0_3 = arith.constant 0 : index
    %c0_4 = arith.constant 0 : index
    %c0_5 = arith.constant 0 : index
    %4 = vector.load %arg1[%c0_3, %c0_4, %c0_5] : memref<1x32x16xbf16, #tpu.memory_space<vmem>>, vector<1x32x16xbf16>
    %5 = vector.shape_cast %4 : vector<1x32x16xbf16> to vector<32x16xbf16>
    %cst = arith.constant dense<0.000000e+00> : vector<8x16xf32>
    %6 = tpu.matmul %0, %5, %cst {dimension_numbers = #tpu.dot_dimension_numbers<[1], [0], [0], [1], [0, 0, 1, 1], [], []>} : vector<8x32xbf16>, vector<32x16xbf16>, vector<8x16xf32> -> vector<8x16xf32>
    %7 = arith.addf %6, %3 : vector<8x16xf32>
    %8 = arith.truncf %7 : vector<8x16xf32> to vector<8x16xbf16>
    %c0_6 = arith.constant 0 : index
    %c0_7 = arith.constant 0 : index
    %c0_8 = arith.constant 0 : index
    %9 = vector.load %arg4[%c0_6, %c0_7, %c0_8] : memref<1x8x16xbf16, #tpu.memory_space<vmem>>, vector<1x8x16xbf16>
    %10 = vector.shape_cast %9 : vector<1x8x16xbf16> to vector<8x16xbf16>
    %11 = vector.shape_cast %8 : vector<8x16xbf16> to vector<1x8x16xbf16>
    tpu.vector_store %arg4[%c0_6, %c0_7, %c0_8], %11 {strides = array<i32>} : memref<1x8x16xbf16, #tpu.memory_space<vmem>>, vector<1x8x16xbf16>,
    return
  }
  func.func @transform_0(%arg0: i32) -> (i32, i32, i32) {
    %c0_i32 = arith.constant 0 : i32
    %c0_i32_0 = arith.constant 0 : i32
    %c0_i32_1 = arith.constant 0 : i32
    return %arg0, %c0_i32, %c0_i32_0 : i32, i32, i32
  }
  func.func @transform_1(%arg0: i32) -> (i32, i32) {
    %c0_i32 = arith.constant 0 : i32
    %c0_i32_0 = arith.constant 0 : i32
    %c0_i32_1 = arith.constant 0 : i32
    return %c0_i32, %c0_i32_0 : i32, i32
  }
  func.func @transform_2(%arg0: i32) -> (i32, i32) {
    %c0_i32 = arith.constant 0 : i32
    %c0_i32_0 = arith.constant 0 : i32
    %c0_i32_1 = arith.constant 0 : i32
    return %c0_i32, %c0_i32_0 : i32, i32
  }
  func.func @transform_3(%arg0: i32) -> (i32, i32, i32) {
    %c0_i32 = arith.constant 0 : i32
    %c0_i32_0 = arith.constant 0 : i32
    %c0_i32_1 = arith.constant 0 : i32
    return %arg0, %c0_i32, %c0_i32_0 : i32, i32, i32
  }
}

</mosaic_0001>

<bundles_post_ra>
// kernel: tpu_custom_call.1
= control target key start
LH: loop header
LB: loop body
LE: loop exit
PB: predicated region body
PF: predicated region fallthrough
CT: control target
= control target key end

     0   :  { %8 = vsyncpa [#allocation3], 0  ;;  %s578_s0 = inlined_call_operand.vmem [shape: bf16[2,32,16], index: 0, kind: input, shape index: {}]   ;;  %s579_s1 = inlined_call_operand.vmem [shape: bf16[8,32], index: 1, kind: input, shape index: {}]   ;;  %s580_s2 = inlined_call_operand.vmem [shape: f32[8,1], index: 2, kind: input, shape index: {}]   ;;  %s581_s3 = inlined_call_operand.hbm [shape: bf16[2,8,16], index: 3, kind: output, shape index: {}]  }
   0x1   :  { %10 = vsyncpa [#allocation3 + $0x1], 0  ;;  %s472_s12 = smov 0   ;;  %s474_s13 = smov 0  }
   0x2   :  { %s476_s14 = smov 0   ;;  %s478_s15 = smov 0  }
   0x3 LB: > { %s493_s16 = sadd.s32 4294967295, %s446_s15   ;;  %s313_s17 = sadd.s32 4294967294, %s446_s15   ;;  %s446_s15 = sphi %s478_s15, %s587_s15   ;;  %s442_s14 = sphi %s476_s14, %s586_s14   ;;  %s438_s13 = sphi %s474_s13, %s585_s13   ;;  %s434_s12 = sphi %s472_s12, %s584_s12  }
   0x4   : > { %s497_s18 = sadd.s32 1, %s446_s15   ;;  %s91_s19 = sadd.s32 1, %s442_s14 }
   0x5   : > { %s88_s20 = ssub.s32 %s446_s15, %s497_s18  ;;  %p101_p0 = scmp.ne.s32.totalorder %s442_s14, %s438_s13 }
   0x6   : > { %p89_p1 = scmp.eq.s32.totalorder %s88_s20, 0  ;;  %p102_p2 = scmp.eq.s32.totalorder %s493_s16, 1 }
   0x7   : > { %p107_p3 = scmp.ne.s32.totalorder %s438_s13, %s434_s12  ;;  %p108_p4 = scmp.eq.s32.totalorder %s313_s17, 1 }
   0x8   : > { %s508_s21 = scalar_select %p89_p1, %s442_s14, %s91_s19  }
   0x9   : > { %p510_p5 = por %p102_p2, %p101_p0  ;;  %p514_p6 = por %p108_p4, %p107_p3 }
   0xa   : > { %p316_p7 = scmp.ge.s32.totalorder %s446_s15, 1  ;;  %p140_p8 = scmp.lt.s32.totalorder %s446_s15, 3 }
   0xc   : > { %p141_p9 = pnand %p316_p7, %p140_p8 }
   0xd   : > { %p164_p10 = scmp.lt.s32.totalorder (!%p141_p9), %s493_s16, 1  ;;  %v448_v0 = vmov (!%p141_p9), 0.0   ;;  %vm449_vm0 = vmmov (!%p141_p9), 0   ;;  %v171_v1 = vld [vmem:[%s580_s2] sm:$0xff] (!%p141_p9)  ;;  %v450_v2 = vmov (!%p141_p9), 0   ;;  %vm193_vm1 = vcmask (!%p141_p9), 261120  }
   0xe   : > { %144 = sbr.rel (%p141_p9) target bundleno = 263 (0x107), region = 32  ;;  %331 = vmatprep.subr.bf16.mxu0 (!%p141_p9), %v448_v0  ;;  %335 = vmatprep.mubr.msk.bf16.mxu0 (!%p141_p9), %vm449_vm0, %v448_v0  ;;  %v170_v5 = vld [vmem:[%s579_s1] sm:$0xf] (!%p141_p9)  ;;  %s161_s6 = sand.u32 (!%p141_p9), 1, %s438_s13   ;;  %vm238_vm2 = vcmask (!%p141_p9), 125952  }
   0xf   : > { %381 = vset.pattern.permute.xlu0 (!%p141_p9), %v450_v2  ;;  %s317_s7 = sshll.u32 (!%p141_p9), %s161_s6, 2  ;;  %s324_s8 = sshll.u32 (!%p141_p9), %s493_s16, 6 }
  0x10   : > { %174 = vperm.xlu0 (!%p141_p9), %381, %v171_v1   ;;  %s163_s9 = scalar_lea.vmem (!%p141_p9), [#allocation2], %s317_s7  ;;  %s536_s19 = scalar_lea.hbm (!%p141_p9), %s581_s3, %s324_s8 }
  0x11   : > { %s254_s10 = sshll.u32 (!%p141_p9), %s163_s9, 4  ;;  %s451_s24 = smov (!%p141_p9), [#allocation2]   ;;  %s538_s10 = int_to_ptr.vmem [resolvable:$true] %s254_s10 }
  0x12   : > { %s384_s20 = scalar_lea.vmem (!%p141_p9), %s538_s10, 64  ;;  %s388_s25 = sshll.u32 (!%p141_p9), %s451_s24, 4  ;;  %s389_s25 = int_to_ptr.vmem [resolvable:$false] %s388_s25 }
  0x13   : > { %p385_p11 = scmp.ne.s32.totalorder (!%p141_p9), %s538_s10, %s384_s20  ;;  %p391_p0 = scmp.lt.s32.totalorder (!%p141_p9), %s538_s10, %s389_s25 }
  0x15   : > { %s165_s26 = scalar_select %p164_p10, %s493_s16, 1 }
  0x16   : > { %s241_s16 = scalar_lea.sflag [#allocation3], %s161_s6  ;;  %p386_p12 = pnand %p385_p11, %p510_p5 }
  0x17   : > { %s327_s27 = sshll.u32 %s165_s26, 4  ;;  %s390_s26 = scalar_lea.vmem %s389_s25, 128 }
  0x18   : > { %s168_s30 = scalar_lea.vmem %s578_s0, %s327_s27  ;;  %p387_p13 = pneg %p386_p12 }
  0x19   : > { %v382_v3 = vld [vmem:[%s168_s30] sm:$0xff]   ;;  %v383_v4 = vld [vmem:[%s168_s30 + $0x8] sm:$0xff]   ;;  %p392_p1 = scmp.lt.s32.totalorder %s390_s26, %s384_s20 }
  0x1a   : > { %332 = vmatpush3.bf16.msra.mxu0 %v382_v3 }
  0x1b   : > { %333 = vmatprep.subr.bf16.mxu0 %v448_v0  ;;  %p393_p2 = por %p392_p1, %p391_p0 }
  0x1d   : > { %p394_p3 = pnand %p393_p2, %p387_p13 }
  0x1e   : > { %334 = vmatpush3.bf16.msra.mxu0 %v383_v4 }
  0x21   : > { %336 = vmatmul.mubr.msk.bf16.vlgmr.msra.gmra.mrb[0].mxu0 %vm193_vm1, %v170_v5 }
  0x8f   : > { %v175_v6 = vpop.permute.xlu0 %174 }
  0xf4   : > { %v231_v7 = vpop.f32.mrb[0].mxu0 }
  0xf5   : > { %v232_v8 = vadd.f32 %v231_v7, %v175_v6  ;;  %v337_v9 = vpop.f32.mrb[1].mxu0 }
  0xf6   : > { %v234_v10 = vpop.f32.mrb[2].mxu0 }
  0xf7   : > { %v237_v11 = vpack.c.bf16 %v232_v8, %v232_v8  ;;  %v338_v12 = vpop.f32.mrb[3].mxu0 }
  0xf9   : > { %239 = vst.msk [vmem:[%s163_s9] sm:$0xf] %vm238_vm2, %v237_v11 }
  0xfa   : > { %397 = shalt.err (!%p394_p3)
}
  0xfb   : > { %s398_s27 = scalar_lea.hbm %s536_s19, 64  ;;  %s402_s30 = scalar_lea.hbm %s581_s3, 128 }
  0xfc   : > { %p399_p4 = scmp.ne.s32.totalorder %s536_s19, %s398_s27  ;;  %p403_p9 = scmp.lt.u32.totalorder %s536_s19, %s581_s3 }
  0xfd   : > { %p404_p10 = scmp.lt.u32.totalorder %s402_s30, %s398_s27  ;;  %p406_p12 = scmp.lt.u32.totalorder %s398_s27, %s536_s19 }
  0xfe   : > { %p400_p7 = pnand %p399_p4, %p510_p5 }
  0xff   : > { %p405_p11 = por %p404_p10, %p403_p9 }
 0x100   : > { %p401_p8 = pneg %p400_p7 }
 0x101   : > { %p407_p13 = por %p406_p12, %p405_p11 }
 0x103   : > { %p408_p0 = pnand %p407_p13, %p401_p8 }
 0x105   : > { %411 = shalt.err (!%p408_p0)
}
 0x106   : > { %339 = dma.vmem_to_hbm [thread:$0]  (%p510_p5), %s538_s10, 64, %s536_s19, %s241_s16  }
 0x107 PF: > { %p345_p1 = scmp.ge.s32.totalorder %s446_s15, 2  ;;  %s266_s6 = sand.u32 1, %s434_s12  }
 0x108   : > { %s267_s7 = scalar_lea.sflag [#allocation3], %s266_s6 }
 0x109   : > { %p342_p2 = pnand %p345_p1, %p514_p6 }
 0x10b   : > { %429 = dma.done.wait (!%p342_p2), %s267_s7, 64  }
 0x10c   : > { %431 = vsyncadd (!%p342_p2), %s267_s7, 4294967232  ;;  %p13_p3 = scmp.ge.s32.totalorder %s497_s18, 4   ;;  %s584_s12 = smov %s438_s13 }
 0x10d   : > { %s585_s13 = smov %s442_s14  ;;  %s586_s14 = smov %s508_s21 }
 0x10e   : > { %s587_s15 = smov %s497_s18  ;;  %15 = sbr.rel (!%p13_p3) target bundleno = 3 (0x3), region = 67 }
 0x115   :  { %272 = vsyncpa [#allocation3], 1 }
 0x116   :  { %274 = vsyncpa [#allocation3 + $0x1], 1 }

</bundles_post_ra>
